<compile_context>
chip_gen: v7x
topology: tpu7x:2x2x1
jax: 0.10.0
libtpu: 0.0.40
codegen_flags: <defaults>
</compile_context>

<pallas_src>
import functools

import jax
import jax.numpy as jnp
from jax.experimental import pallas as pl
from jax.experimental.pallas import tpu as pltpu


# ---------------------------------------------------------------------------
# Kernels
# ---------------------------------------------------------------------------
def _fc_resblock_kernel_proj(x_ref, w13_ref, b13_ref, w2_ref, b2_ref, o_ref,
                             *, nh_p):
    """Nin != Nout: residual through fc3, fused with fc1 into one matmul."""
    x = x_ref[...]
    x_mxu = x.astype(w13_ref.dtype)                      # bf16 MXU operand
    # Fused fc1|fc3: one MXU RHS push / one result drain over the shared LHS.
    r = jnp.dot(x_mxu, w13_ref[...],
                preferred_element_type=jnp.float32) + b13_ref[...]
    h = jnp.maximum(r[:, :nh_p], 0.0)                    # relu(fc1(x)) (+0 pad)
    skip = r[:, nh_p:]                                   # fc3(x), no relu
    out = jnp.dot(h.astype(w2_ref.dtype), w2_ref[...],
                  preferred_element_type=jnp.float32) + b2_ref[...]
    o_ref[...] = jnp.maximum(out + skip, 0.0).astype(o_ref.dtype)


def _fc_resblock_kernel_identity(x_ref, w1_ref, b1_ref, w2_ref, b2_ref, o_ref):
    """Nin == Nout: identity residual (kept in f32 for the epilogue)."""
    x = x_ref[...]
    x_mxu = x.astype(w1_ref.dtype)
    h = jnp.maximum(
        jnp.dot(x_mxu, w1_ref[...], preferred_element_type=jnp.float32)
        + b1_ref[...], 0.0)
    out = jnp.dot(h.astype(w2_ref.dtype), w2_ref[...],
                  preferred_element_type=jnp.float32) + b2_ref[...]
    o_ref[...] = jnp.maximum(out + x.astype(jnp.float32), 0.0).astype(o_ref.dtype)


# ---------------------------------------------------------------------------
# Wrapper
# ---------------------------------------------------------------------------
def _round_up(n, m):
    return ((n + m - 1) // m) * m


def _cdiv(a, b):
    return (a + b - 1) // b


def _vmem_limit_bytes():
    """Explicit scoped-VMEM limit: generous, but safe on every generation."""
    try:
        cap = int(pltpu.get_tpu_info().vmem_capacity_bytes)
    except Exception:
        cap = 64 * 1024 * 1024          # v7x has the smallest physical VMEM
    # ~75% of physical; always >= the default scoped limit of any chip.
    return max(32 * 1024 * 1024, (cap * 3) // 4)


def fc_resblock(x, params, *, tm=None):
    """Apply fc_ResBlock.  x: [B, Nin] (float32 or bfloat16).

    params stores weights transposed vs PyTorch:
      w1 [Nin, Nh], b1 [1, Nh], w2 [Nh, Nout], b2 [1, Nout],
      and (iff Nin != Nout) w3 [Nin, Nout], b3 [1, Nout].
    Returns [B, Nout] in x.dtype.
    """
    B, Nin = int(x.shape[0]), int(x.shape[1])
    w1, b1 = params["w1"], params["b1"]
    w2, b2 = params["w2"], params["b2"]
    Nh, Nout = int(w1.shape[1]), int(w2.shape[1])
    proj = "w3" in params
    w_dtype = jnp.bfloat16

    x_isz = jnp.dtype(x.dtype).itemsize
    o_isz = x_isz

    vmem_limit = _vmem_limit_bytes()
    budget = vmem_limit - (2 << 20)          # headroom for compiler scratch

    # ---- weight / bias prep (VMEM-resident for the whole grid) ------------
    if proj:
        nh_p = _round_up(Nh, 128)            # tile-aligned split for fc1|fc3
        w3, b3 = params["w3"], params["b3"]
        w13 = jnp.zeros((Nin, nh_p + Nout), w_dtype)
        w13 = w13.at[:, :Nh].set(w1.astype(w_dtype))
        w13 = w13.at[:, nh_p:].set(w3.astype(w_dtype))
        b13 = jnp.zeros((1, nh_p + Nout), jnp.float32)
        b13 = b13.at[:, :Nh].set(b1.astype(jnp.float32))
        b13 = b13.at[:, nh_p:].set(b3.astype(jnp.float32))
        w2p = jnp.zeros((nh_p, Nout), w_dtype).at[:Nh, :].set(w2.astype(w_dtype))
        consts = (w13, b13, w2p, b2.astype(jnp.float32))
        kernel = functools.partial(_fc_resblock_kernel_proj, nh_p=nh_p)
        h_cols, skip_cols = nh_p, Nout
    else:
        consts = (w1.astype(w_dtype), b1.astype(jnp.float32),
                  w2.astype(w_dtype), b2.astype(jnp.float32))
        kernel = _fc_resblock_kernel_identity
        h_cols, skip_cols = Nh, Nin          # f32 copy of x for the residual

    weight_bytes = sum(int(a.size) * jnp.dtype(a.dtype).itemsize for a in consts)
    if weight_bytes > (budget * 3) // 4:
        # TODO(synk): large-layer fallback (Nh/Nout-tiled grid with an f32
        # accumulator scratch) not implemented; weights must stay resident.
        raise ValueError("fc_resblock: weights too large to keep VMEM-resident")

    # ---- batch-tile sizing --------------------------------------------------
    sub = 16 if x.dtype == jnp.bfloat16 else 8   # sublane packing granule

    def tile_bytes(t, w_bufs):
        io = 2 * t * Nin * x_isz + 2 * t * Nout * o_isz        # dbl-buffered x/y
        # Epilogue live set: f32 matmul result(s), bf16 h, f32 out, bf16 x.
        tmp = t * ((h_cols + skip_cols) * 4 + h_cols * 2 + Nout * 4 + Nin * 2)
        return io + tmp + w_bufs * weight_bytes

    if tm is None:
        tm = min(2048, _round_up(B, sub))
    tm = max(sub, _round_up(int(tm), sub))
    tm = min(tm, _round_up(B, sub))
    while tm > sub and tile_bytes(tm, 1) > budget:
        tm -= sub

    # Keep >=2 grid steps (>=4 when the batch is large) so the "parallel"
    # batch axis can actually shard across v7x's two TensorCores.
    if B >= 512:
        tm = min(tm, _round_up(_cdiv(B, 4), sub))
    elif B >= 8 * sub:
        tm = min(tm, _round_up(_cdiv(B, 2), sub))
    tm = max(sub, tm)

    grid = (_cdiv(B, tm),)

    # ---- specs / cost estimate ---------------------------------------------
    x_spec = pl.BlockSpec((tm, Nin), lambda i: (i, 0))
    out_spec = pl.BlockSpec((tm, Nout), lambda i: (i, 0))

    flops = 2 * B * (Nin * Nh + Nh * Nout + (Nin * Nout if proj else 0))
    bytes_accessed = B * Nin * x_isz + B * Nout * o_isz + weight_bytes
    cost = pl.CostEstimate(flops=int(flops), transcendentals=0,
                           bytes_accessed=int(bytes_accessed))

    def build(weight_buffer_count):
        def resident(a):
            # Same block index every grid step -> stays VMEM-resident.
            if weight_buffer_count == 1:
                return pl.BlockSpec(a.shape, lambda i: (0, 0),
                                    pipeline_mode=pl.Buffered(1))
            return pl.BlockSpec(a.shape, lambda i: (0, 0))

        return pl.pallas_call(
            kernel,
            out_shape=jax.ShapeDtypeStruct((B, Nout), x.dtype),
            grid=grid,
            in_specs=[x_spec] + [resident(a) for a in consts],
            out_specs=out_spec,
            compiler_params=pltpu.CompilerParams(
                dimension_semantics=("parallel",),
                vmem_limit_bytes=int(vmem_limit)),
            cost_estimate=cost,
        )

    try:
        # Resident operands never change block index -> single-buffer them.
        return jax.block_until_ready(build(1)(x, *consts))
    except Exception:
        # Fallback: default double-buffered pipelining (always supported).
        return jax.block_until_ready(build(2)(x, *consts))


# ---------------------------------------------------------------------------
# Deterministic parameter init (mimics PyTorch nn.Linear default: U(-k, k),
# k = 1/sqrt(fan_in)).
# ---------------------------------------------------------------------------
def init_params(key, Nin, Nout):
    Nh = Nin * 2
    params = {}

    def linear(key, fan_in, fan_out):
        kw, kb = jax.random.split(key)
        bound = 1.0 / jnp.sqrt(fan_in)
        w = jax.random.uniform(kw, (fan_in, fan_out), jnp.float32, -bound, bound)
        b = jax.random.uniform(kb, (1, fan_out), jnp.float32, -bound, bound)
        return w, b

    k1, k2, k3 = jax.random.split(key, 3)
    params["w1"], params["b1"] = linear(k1, Nin, Nh)
    params["w2"], params["b2"] = linear(k2, Nh, Nout)
    if Nin != Nout:
        params["w3"], params["b3"] = linear(k3, Nin, Nout)
    return params


def fc_resblock_ref(x, params):
    """Pure-JAX reference matching the kernel math (bf16 operands, f32 acc)."""
    xb = x.astype(jnp.bfloat16)
    h = jnp.dot(xb, params["w1"].astype(jnp.bfloat16),
                preferred_element_type=jnp.float32) + params["b1"]
    h = jnp.maximum(h, 0.0)
    out = jnp.dot(h.astype(jnp.bfloat16), params["w2"].astype(jnp.bfloat16),
                  preferred_element_type=jnp.float32) + params["b2"]
    if "w3" in params:
        skip = jnp.dot(xb, params["w3"].astype(jnp.bfloat16),
                       preferred_element_type=jnp.float32) + params["b3"]
    else:
        skip = x.astype(jnp.float32)
    return jnp.maximum(out + skip, 0.0)


# ---------------------------------------------------------------------------
if __name__ == "__main__":
    key = jax.random.PRNGKey(0)
    kx1, kx3, kp1, kp2 = jax.random.split(key, 4)

    # Case 1: Nin != Nout -> fused fc1|fc3 projection path (single batch tile).
    B, Nin, Nout = 8, 32, 48
    params = init_params(kp1, Nin, Nout)
    x = jax.random.normal(kx1, (B, Nin), jnp.float32)
    y = fc_resblock(x, params)
    assert y.shape == (B, Nout)
    assert jnp.allclose(y, fc_resblock_ref(x, params), atol=2e-3, rtol=2e-3)

    # Case 2: Nin == Nout -> identity residual path.
    params2 = init_params(kp2, 32, 32)
    x2 = jax.random.normal(kx1, (B, 32), jnp.float32)
    y2 = fc_resblock(x2, params2)
    assert y2.shape == (B, 32)
    assert jnp.allclose(y2, fc_resblock_ref(x2, params2), atol=2e-3, rtol=2e-3)

    # Case 3: bf16 activations, multi-step grid with a masked last block
    # (exercises the cdiv grid, VMEM-resident weights across steps, and the
    # halved-byte bf16 in/out streaming path).
    B3 = 200
    x3 = jax.random.normal(kx3, (B3, Nin), jnp.float32).astype(jnp.bfloat16)
    y3 = fc_resblock(x3, params)
    assert y3.shape == (B3, Nout) and y3.dtype == jnp.bfloat16
    ref3 = fc_resblock_ref(x3, params)
    assert jnp.allclose(y3.astype(jnp.float32), ref3, atol=3e-2, rtol=3e-2)

    print("KERNEL_OK")
</pallas_src>

<mosaic_0001>
module attributes {stable_mosaic.version = 11 : i64} {
  func.func @_fc_resblock_kernel_proj(%arg0: i32, %arg1: memref<8x32xf32, #tpu.memory_space<vmem>>, %arg2: memref<32x176xbf16, #tpu.memory_space<vmem>>, %arg3: memref<1x176xf32, #tpu.memory_space<vmem>>, %arg4: memref<128x48xbf16, #tpu.memory_space<vmem>>, %arg5: memref<1x48xf32, #tpu.memory_space<vmem>>, %arg6: memref<8x48xf32, #tpu.memory_space<vmem>>) attributes {dimension_semantics = [#tpu.dimension_semantics<parallel>], iteration_bounds = array<i64: 1>, scalar_prefetch = 0 : i64, scratch_operands = 0 : i64, tpu.core_type = #tpu.core_type<tc>, window_params = [{transform_indices = @transform_0, window_bounds = array<i64: 8, 32>}, {pipeline_mode = #tpu.pipeline_mode<synchronous>, transform_indices = @transform_1, window_bounds = array<i64: 32, 176>}, {pipeline_mode = #tpu.pipeline_mode<synchronous>, transform_indices = @transform_2, window_bounds = array<i64: 1, 176>}, {pipeline_mode = #tpu.pipeline_mode<synchronous>, transform_indices = @transform_3, window_bounds = array<i64: 128, 48>}, {pipeline_mode = #tpu.pipeline_mode<synchronous>, transform_indices = @transform_4, window_bounds = array<i64: 1, 48>}, {transform_indices = @transform_5, window_bounds = array<i64: 8, 48>}]} {
    %c0 = arith.constant 0 : index
    %c0_0 = arith.constant 0 : index
    %0 = vector.load %arg1[%c0, %c0_0] : memref<8x32xf32, #tpu.memory_space<vmem>>, vector<8x32xf32>
    %1 = arith.truncf %0 : vector<8x32xf32> to vector<8x32xbf16>
    %c0_1 = arith.constant 0 : index
    %c0_2 = arith.constant 0 : index
    %2 = vector.load %arg2[%c0_1, %c0_2] : memref<32x176xbf16, #tpu.memory_space<vmem>>, vector<32x176xbf16>
    %cst = arith.constant dense<0.000000e+00> : vector<8x176xf32>
    %3 = tpu.matmul %1, %2, %cst {dimension_numbers = #tpu.dot_dimension_numbers<[1], [0], [0], [1], [0, 0, 1, 1], [], []>} : vector<8x32xbf16>, vector<32x176xbf16>, vector<8x176xf32> -> vector<8x176xf32>
    %c0_3 = arith.constant 0 : index
    %c0_4 = arith.constant 0 : index
    %4 = vector.load %arg3[%c0_3, %c0_4] : memref<1x176xf32, #tpu.memory_space<vmem>>, vector<1x176xf32>
    %5 = vector.broadcast %4 : vector<1x176xf32> to vector<8x176xf32>
    %6 = arith.addf %3, %5 : vector<8x176xf32>
    %7 = vector.extract_strided_slice %6 {offsets = [0, 0], sizes = [8, 128], strides = [1, 1]} : vector<8x176xf32> to vector<8x128xf32>
    %cst_5 = arith.constant 0.000000e+00 : f32
    %8 = vector.broadcast %cst_5 : f32 to vector<8x128xf32>
    %9 = arith.maximumf %7, %8 : vector<8x128xf32>
    %10 = vector.extract_strided_slice %6 {offsets = [0, 128], sizes = [8, 48], strides = [1, 1]} : vector<8x176xf32> to vector<8x48xf32>
    %11 = arith.truncf %9 : vector<8x128xf32> to vector<8x128xbf16>
    %c0_6 = arith.constant 0 : index
    %c0_7 = arith.constant 0 : index
    %12 = vector.load %arg4[%c0_6, %c0_7] : memref<128x48xbf16, #tpu.memory_space<vmem>>, vector<128x48xbf16>
    %cst_8 = arith.constant dense<0.000000e+00> : vector<8x48xf32>
    %13 = tpu.matmul %11, %12, %cst_8 {dimension_numbers = #tpu.dot_dimension_numbers<[1], [0], [0], [1], [0, 0, 1, 1], [], []>} : vector<8x128xbf16>, vector<128x48xbf16>, vector<8x48xf32> -> vector<8x48xf32>
    %c0_9 = arith.constant 0 : index
    %c0_10 = arith.constant 0 : index
    %14 = vector.load %arg5[%c0_9, %c0_10] : memref<1x48xf32, #tpu.memory_space<vmem>>, vector<1x48xf32>
    %15 = vector.broadcast %14 : vector<1x48xf32> to vector<8x48xf32>
    %16 = arith.addf %13, %15 : vector<8x48xf32>
    %17 = arith.addf %16, %10 : vector<8x48xf32>
    %cst_11 = arith.constant 0.000000e+00 : f32
    %18 = vector.broadcast %cst_11 : f32 to vector<8x48xf32>
    %19 = arith.maximumf %17, %18 : vector<8x48xf32>
    %c0_12 = arith.constant 0 : index
    %c0_13 = arith.constant 0 : index
    %20 = vector.load %arg6[%c0_12, %c0_13] : memref<8x48xf32, #tpu.memory_space<vmem>>, vector<8x48xf32>
    tpu.vector_store %arg6[%c0_12, %c0_13], %19 {strides = array<i32>} : memref<8x48xf32, #tpu.memory_space<vmem>>, vector<8x48xf32>,
    return
  }
  func.func @transform_0(%arg0: i32) -> (i32, i32) {
    %c0_i32 = arith.constant 0 : i32
    %c0_i32_0 = arith.constant 0 : i32
    return %arg0, %c0_i32 : i32, i32
  }
  func.func @transform_1(%arg0: i32) -> (i32, i32) {
    %c0_i32 = arith.constant 0 : i32
    %c0_i32_0 = arith.constant 0 : i32
    %c0_i32_1 = arith.constant 0 : i32
    return %c0_i32, %c0_i32_0 : i32, i32
  }
  func.func @transform_2(%arg0: i32) -> (i32, i32) {
    %c0_i32 = arith.constant 0 : i32
    %c0_i32_0 = arith.constant 0 : i32
    %c0_i32_1 = arith.constant 0 : i32
    return %c0_i32, %c0_i32_0 : i32, i32
  }
  func.func @transform_3(%arg0: i32) -> (i32, i32) {
    %c0_i32 = arith.constant 0 : i32
    %c0_i32_0 = arith.constant 0 : i32
    %c0_i32_1 = arith.constant 0 : i32
    return %c0_i32, %c0_i32_0 : i32, i32
  }
  func.func @transform_4(%arg0: i32) -> (i32, i32) {
    %c0_i32 = arith.constant 0 : i32
    %c0_i32_0 = arith.constant 0 : i32
    %c0_i32_1 = arith.constant 0 : i32
    return %c0_i32, %c0_i32_0 : i32, i32
  }
  func.func @transform_5(%arg0: i32) -> (i32, i32) {
    %c0_i32 = arith.constant 0 : i32
    %c0_i32_0 = arith.constant 0 : i32
    return %arg0, %c0_i32 : i32, i32
  }
}

module attributes {stable_mosaic.version = 11 : i64} {
  func.func @_fc_resblock_kernel_proj(%arg0: i32, %arg1: memref<8x32xf32, #tpu.memory_space<vmem>>, %arg2: memref<32x176xbf16, #tpu.memory_space<vmem>>, %arg3: memref<1x176xf32, #tpu.memory_space<vmem>>, %arg4: memref<128x48xbf16, #tpu.memory_space<vmem>>, %arg5: memref<1x48xf32, #tpu.memory_space<vmem>>, %arg6: memref<8x48xf32, #tpu.memory_space<vmem>>) attributes {dimension_semantics = [#tpu.dimension_semantics<parallel>], iteration_bounds = array<i64: 1>, scalar_prefetch = 0 : i64, scratch_operands = 0 : i64, tpu.core_type = #tpu.core_type<tc>, window_params = [{transform_indices = @transform_0, window_bounds = array<i64: 8, 32>}, {pipeline_mode = #tpu.pipeline_mode<synchronous>, transform_indices = @transform_1, window_bounds = array<i64: 32, 176>}, {pipeline_mode = #tpu.pipeline_mode<synchronous>, transform_indices = @transform_2, window_bounds = array<i64: 1, 176>}, {pipeline_mode = #tpu.pipeline_mode<synchronous>, transform_indices = @transform_3, window_bounds = array<i64: 128, 48>}, {pipeline_mode = #tpu.pipeline_mode<synchronous>, transform_indices = @transform_4, window_bounds = array<i64: 1, 48>}, {transform_indices = @transform_5, window_bounds = array<i64: 8, 48>}]} {
    %c0 = arith.constant 0 : index
    %c0_0 = arith.constant 0 : index
    %0 = vector.load %arg1[%c0, %c0_0] : memref<8x32xf32, #tpu.memory_space<vmem>>, vector<8x32xf32>
    %1 = arith.truncf %0 : vector<8x32xf32> to vector<8x32xbf16>
    %c0_1 = arith.constant 0 : index
    %c0_2 = arith.constant 0 : index
    %2 = vector.load %arg2[%c0_1, %c0_2] : memref<32x176xbf16, #tpu.memory_space<vmem>>, vector<32x176xbf16>
    %cst = arith.constant dense<0.000000e+00> : vector<8x176xf32>
    %3 = tpu.matmul %1, %2, %cst {dimension_numbers = #tpu.dot_dimension_numbers<[1], [0], [0], [1], [0, 0, 1, 1], [], []>} : vector<8x32xbf16>, vector<32x176xbf16>, vector<8x176xf32> -> vector<8x176xf32>
    %c0_3 = arith.constant 0 : index
    %c0_4 = arith.constant 0 : index
    %4 = vector.load %arg3[%c0_3, %c0_4] : memref<1x176xf32, #tpu.memory_space<vmem>>, vector<1x176xf32>
    %5 = vector.broadcast %4 : vector<1x176xf32> to vector<8x176xf32>
    %6 = arith.addf %3, %5 : vector<8x176xf32>
    %7 = vector.extract_strided_slice %6 {offsets = [0, 0], sizes = [8, 128], strides = [1, 1]} : vector<8x176xf32> to vector<8x128xf32>
    %cst_5 = arith.constant 0.000000e+00 : f32
    %8 = vector.broadcast %cst_5 : f32 to vector<8x128xf32>
    %9 = arith.maximumf %7, %8 : vector<8x128xf32>
    %10 = vector.extract_strided_slice %6 {offsets = [0, 128], sizes = [8, 48], strides = [1, 1]} : vector<8x176xf32> to vector<8x48xf32>
    %11 = arith.truncf %9 : vector<8x128xf32> to vector<8x128xbf16>
    %c0_6 = arith.constant 0 : index
    %c0_7 = arith.constant 0 : index
    %12 = vector.load %arg4[%c0_6, %c0_7] : memref<128x48xbf16, #tpu.memory_space<vmem>>, vector<128x48xbf16>
    %cst_8 = arith.constant dense<0.000000e+00> : vector<8x48xf32>
    %13 = tpu.matmul %11, %12, %cst_8 {dimension_numbers = #tpu.dot_dimension_numbers<[1], [0], [0], [1], [0, 0, 1, 1], [], []>} : vector<8x128xbf16>, vector<128x48xbf16>, vector<8x48xf32> -> vector<8x48xf32>
    %c0_9 = arith.constant 0 : index
    %c0_10 = arith.constant 0 : index
    %14 = vector.load %arg5[%c0_9, %c0_10] : memref<1x48xf32, #tpu.memory_space<vmem>>, vector<1x48xf32>
    %15 = vector.broadcast %14 : vector<1x48xf32> to vector<8x48xf32>
    %16 = arith.addf %13, %15 : vector<8x48xf32>
    %17 = arith.addf %16, %10 : vector<8x48xf32>
    %cst_11 = arith.constant 0.000000e+00 : f32
    %18 = vector.broadcast %cst_11 : f32 to vector<8x48xf32>
    %19 = arith.maximumf %17, %18 : vector<8x48xf32>
    %c0_12 = arith.constant 0 : index
    %c0_13 = arith.constant 0 : index
    %20 = vector.load %arg6[%c0_12, %c0_13] : memref<8x48xf32, #tpu.memory_space<vmem>>, vector<8x48xf32>
    tpu.vector_store %arg6[%c0_12, %c0_13], %19 {strides = array<i32>} : memref<8x48xf32, #tpu.memory_space<vmem>>, vector<8x48xf32>,
    return
  }
  func.func @transform_0(%arg0: i32) -> (i32, i32) {
    %c0_i32 = arith.constant 0 : i32
    %c0_i32_0 = arith.constant 0 : i32
    return %arg0, %c0_i32 : i32, i32
  }
  func.func @transform_1(%arg0: i32) -> (i32, i32) {
    %c0_i32 = arith.constant 0 : i32
    %c0_i32_0 = arith.constant 0 : i32
    %c0_i32_1 = arith.constant 0 : i32
    return %c0_i32, %c0_i32_0 : i32, i32
  }
  func.func @transform_2(%arg0: i32) -> (i32, i32) {
    %c0_i32 = arith.constant 0 : i32
    %c0_i32_0 = arith.constant 0 : i32
    %c0_i32_1 = arith.constant 0 : i32
    return %c0_i32, %c0_i32_0 : i32, i32
  }
  func.func @transform_3(%arg0: i32) -> (i32, i32) {
    %c0_i32 = arith.constant 0 : i32
    %c0_i32_0 = arith.constant 0 : i32
    %c0_i32_1 = arith.constant 0 : i32
    return %c0_i32, %c0_i32_0 : i32, i32
  }
  func.func @transform_4(%arg0: i32) -> (i32, i32) {
    %c0_i32 = arith.constant 0 : i32
    %c0_i32_0 = arith.constant 0 : i32
    %c0_i32_1 = arith.constant 0 : i32
    return %c0_i32, %c0_i32_0 : i32, i32
  }
  func.func @transform_5(%arg0: i32) -> (i32, i32) {
    %c0_i32 = arith.constant 0 : i32
    %c0_i32_0 = arith.constant 0 : i32
    return %arg0, %c0_i32 : i32, i32
  }
}

</mosaic_0001>

<bundles_post_ra>
// kernel: tpu_custom_call.1
= control target key start
LH: loop header
LB: loop body
LE: loop exit
PB: predicated region body
PF: predicated region fallthrough
CT: control target
= control target key end

     0   :  { %v321_v2 = vmov 0   ;;  %v322_v6 = vmov 0.0   ;;  %vm60_vm0 = vcmask 261120   ;;  %s412_s0 = inlined_call_operand.vmem [shape: f32[8,32], index: 0, kind: input, shape index: {}]   ;;  %s413_s1 = inlined_call_operand.vmem [shape: bf16[32,176], index: 1, kind: input, shape index: {}]   ;;  %s414_s2 = inlined_call_operand.vmem [shape: f32[1,176], index: 2, kind: input, shape index: {}]   ;;  %s415_s3 = inlined_call_operand.vmem [shape: bf16[128,48], index: 3, kind: input, shape index: {}]   ;;  %s416_s4 = inlined_call_operand.vmem [shape: f32[1,48], index: 4, kind: input, shape index: {}]   ;;  %s417_s5 = inlined_call_operand.hbm [shape: f32[8,48], index: 5, kind: output, shape index: {}]  }
   0x1   :  { %v283_v0 = vld [vmem:[%s413_s1 + $0x4] ss:$8 sps:$4 sm:$0xff]   ;;  %v285_v1 = vld [vmem:[%s413_s1] ss:$8 sps:$4 sm:$0xff]   ;;  %96 = vmatprep.mubr.bf16.mxu0 %v321_v2  ;;  %v286_v3 = vld [vmem:[%s413_s1 + $0x14] ss:$8 sps:$4 sm:$0xff]   ;;  %259 = vmatprep.subr.bf16.mxu1 %v322_v6 }
   0x2   :  { %64 = vmatprep.subr.bf16.mxu0 %v283_v0  ;;  %v288_v4 = vld [vmem:[%s413_s1 + $0x10] ss:$8 sps:$4 sm:$0xff]   ;;  %v22_v5 = vld [vmem:[%s412_s0] sm:$0xff]  ;;  %v290_v8 = vld [vmem:[%s415_s3 + $0x8] sm:$0xff]  }
   0x3   :  { %65 = vmatpush1.bf16.msra.mxu0 %v285_v1  ;;  %v289_v7 = vld [vmem:[%s415_s3] sm:$0xff]   ;;  %v23_v9 = vpack.c.bf16 %v22_v5, %v22_v5  ;;  %v291_v10 = vld [vmem:[%s415_s3 + $0x10] sm:$0xff]  }
   0x4   :  { %66 = vmatprep.subr.bf16.mxu0 %v286_v3  ;;  %260 = vmatpush3.bf16.msra.mxu1 %v289_v7 }
   0x5   :  { %261 = vmatprep.subr.bf16.mxu1 %v322_v6 }
   0x7   :  { %67 = vmatpush1.bf16.msra.mxu0 %v288_v4 }
   0x8   :  { %262 = vmatpush3.bf16.msra.mxu1 %v290_v8 }
   0x9   :  { %263 = vmatprep.subr.bf16.mxu1 %v322_v6 }
   0xa   :  { %240 = vmatmul.mubr.msk.bf16.vlgmr.msra.gmra.mrb[0].mxu0 %vm60_vm0, %v23_v9 }
   0xb   :  { %10 = vsyncpa [#allocation3], 0  ;;  %v292_v11 = vld [vmem:[%s415_s3 + $0x18] sm:$0xff]   ;;  %v293_v12 = vld [vmem:[%s415_s3 + $0x20] sm:$0xff]   ;;  %vm323_vm1 = vmmov 0   ;;  %v30_v16 = vlaneseq  ;;  %vm220_vm2 = vcmask 392192  }
   0xc   :  { %264 = vmatpush3.bf16.msra.mxu1 %v291_v10  ;;  %v294_v13 = vld [vmem:[%s415_s3 + $0x28] sm:$0xff]   ;;  %v295_v14 = vld [vmem:[%s415_s3 + $0x30] sm:$0xff]   ;;  %v296_v15 = vld [vmem:[%s415_s3 + $0x38] sm:$0xff]   ;;  %275 = vmatprep.mubr.msk.bf16.mxu1 %vm323_vm1, %v322_v6 }
   0xd   :  { %265 = vmatprep.subr.bf16.mxu1 %v322_v6  ;;  %v31_v17 = vshrl.u32 %v30_v16, 7  ;;  %v28_v19 = vld [vmem:[%s414_s2] sm:$0x3]  ;;  %s324_s2 = smov [#allocation2]  }
   0xe   :  { %v241_v30 = vld [vmem:[%s416_s4] ss:$0 sm:$0xff]  ;;  %s228_s20 = sshll.u32 %s324_s2, 4  ;;  %s229_s20 = int_to_ptr.vmem [resolvable:$true] %s228_s20 }
   0xf   :  { %v32_v18 = vsub.s32 0, %v31_v17  ;;  %v36_v28 = vsub.s32 1, %v31_v17  ;;  %s297_s21 = scalar_lea.vmem %s229_s20, 128  ;;  %p302_p1 = scmp.lt.s32.totalorder %s229_s20, %s229_s20 }
  0x10   :  { %266 = vmatpush3.bf16.msra.mxu1 %v292_v11  ;;  %p298_p0 = scmp.ne.s32.totalorder %s229_s20, %s297_s21  ;;  %p303_p2 = scmp.lt.s32.totalorder %s297_s21, %s297_s21 }
  0x11   :  { %267 = vmatprep.subr.bf16.mxu1 %v322_v6  ;;  %v33_v20 = vrot.slane %v28_v19, %v32_v18  ;;  %v37_v29 = vrot.slane %v28_v19, %v36_v28 }
  0x12   :  { %p304_p3 = por %p303_p2, %p302_p1 }
  0x14   :  { %268 = vmatpush3.bf16.msra.mxu1 %v293_v12  ;;  %p305_p4 = pnand %p304_p3, %p298_p0 }
  0x15   :  { %269 = vmatprep.subr.bf16.mxu1 %v322_v6 }
  0x18   :  { %270 = vmatpush3.bf16.msra.mxu1 %v294_v13 }
  0x19   :  { %271 = vmatprep.subr.bf16.mxu1 %v322_v6 }
  0x1c   :  { %272 = vmatpush3.bf16.msra.mxu1 %v295_v14 }
  0x1d   :  { %273 = vmatprep.subr.bf16.mxu1 %v322_v6 }
  0x20   :  { %274 = vmatpush3.bf16.msra.mxu1 %v296_v15 }
  0xdd   :  { %v98_v21 = vpop.f32.mrb[0].mxu0 }
  0xde   :  { %v99_v22 = vadd.f32 %v98_v21, %v33_v20  ;;  %v100_v23 = vpop.f32.mrb[1].mxu0 }
  0xdf   :  { %v102_v24 = vpop.f32.mrb[2].mxu0  ;;  %v101_v32 = vadd.f32 %v100_v23, %v37_v29 }
  0xe0   :  { %v105_v25 = vmax.f32 %v99_v22, 0.0  ;;  %v103_v26 = vpop.f32.mrb[3].mxu0 }
  0xe2   :  { %v106_v27 = vpack.c.bf16 %v105_v25, %v105_v25 }
  0xe4   :  { %276 = vmatmul.mubr.bf16.vlgmr.msra.gmra.mrb[0].mxu1 %v106_v27 }
 0x1b7   :  { %v212_v31 = vpop.f32.mrb[0].mxu1 }
 0x1b8   :  { %v213_v33 = vadd.f32 %v241_v30, %v212_v31  ;;  %v277_v34 = vpop.f32.mrb[1].mxu1 }
 0x1b9   :  { %v215_v35 = vpop.f32.mrb[2].mxu1 }
 0x1ba   :  { %v218_v36 = vadd.f32 %v213_v33, %v101_v32  ;;  %v278_v37 = vpop.f32.mrb[3].mxu1 }
 0x1bc   :  { %v219_v38 = vmax.f32 %v218_v36, 0.0 }
 0x1be   :  { %221 = vst.msk [vmem:[#allocation2] sm:$0xff] %vm220_vm2, %v219_v38 }
 0x1bf   :  { %308 = shalt.err (!%p305_p4)
}
 0x1c0   :  { %s309_s23 = scalar_lea.hbm %s417_s5, 128 }
 0x1c1   :  { %p310_p5 = scmp.ne.s32.totalorder %s417_s5, %s309_s23  ;;  %p313_p6 = scmp.lt.u32.totalorder %s309_s23, %s417_s5 }
 0x1c3   :  { %p315_p7 = pnand %p313_p6, %p310_p5 }
 0x1c5   :  { %318 = shalt.err (!%p315_p7)
}
 0x1c6   :  { %231 = dma.vmem_to_hbm [thread:$0]  %s229_s20, 128, %s417_s5, [#allocation3]  }
 0x1c7   :  { %319 = dma.done.wait [#allocation3], 128  }
 0x1c8   :  { %320 = vsyncadd [#allocation3], 4294967168 }
 0x1c9   :  { %235 = vsyncpa [#allocation3], 1 }

// kernel: tpu_custom_call.1
= control target key start
LH: loop header
LB: loop body
LE: loop exit
PB: predicated region body
PF: predicated region fallthrough
CT: control target
= control target key end

     0   :  { %v321_v2 = vmov 0   ;;  %v322_v6 = vmov 0.0   ;;  %vm60_vm0 = vcmask 261120   ;;  %s412_s0 = inlined_call_operand.vmem [shape: f32[8,32], index: 0, kind: input, shape index: {}]   ;;  %s413_s1 = inlined_call_operand.vmem [shape: bf16[32,176], index: 1, kind: input, shape index: {}]   ;;  %s414_s2 = inlined_call_operand.vmem [shape: f32[1,176], index: 2, kind: input, shape index: {}]   ;;  %s415_s3 = inlined_call_operand.vmem [shape: bf16[128,48], index: 3, kind: input, shape index: {}]   ;;  %s416_s4 = inlined_call_operand.vmem [shape: f32[1,48], index: 4, kind: input, shape index: {}]   ;;  %s417_s5 = inlined_call_operand.hbm [shape: f32[8,48], index: 5, kind: output, shape index: {}]  }
   0x1   :  { %v283_v0 = vld [vmem:[%s413_s1 + $0x4] ss:$8 sps:$4 sm:$0xff]   ;;  %v285_v1 = vld [vmem:[%s413_s1] ss:$8 sps:$4 sm:$0xff]   ;;  %96 = vmatprep.mubr.bf16.mxu0 %v321_v2  ;;  %v286_v3 = vld [vmem:[%s413_s1 + $0x14] ss:$8 sps:$4 sm:$0xff]   ;;  %259 = vmatprep.subr.bf16.mxu1 %v322_v6 }
   0x2   :  { %64 = vmatprep.subr.bf16.mxu0 %v283_v0  ;;  %v288_v4 = vld [vmem:[%s413_s1 + $0x10] ss:$8 sps:$4 sm:$0xff]   ;;  %v22_v5 = vld [vmem:[%s412_s0] sm:$0xff]  ;;  %v290_v8 = vld [vmem:[%s415_s3 + $0x8] sm:$0xff]  }
   0x3   :  { %65 = vmatpush1.bf16.msra.mxu0 %v285_v1  ;;  %v289_v7 = vld [vmem:[%s415_s3] sm:$0xff]   ;;  %v23_v9 = vpack.c.bf16 %v22_v5, %v22_v5  ;;  %v291_v10 = vld [vmem:[%s415_s3 + $0x10] sm:$0xff]  }
   0x4   :  { %66 = vmatprep.subr.bf16.mxu0 %v286_v3  ;;  %260 = vmatpush3.bf16.msra.mxu1 %v289_v7 }
   0x5   :  { %261 = vmatprep.subr.bf16.mxu1 %v322_v6 }
   0x7   :  { %67 = vmatpush1.bf16.msra.mxu0 %v288_v4 }
   0x8   :  { %262 = vmatpush3.bf16.msra.mxu1 %v290_v8 }
   0x9   :  { %263 = vmatprep.subr.bf16.mxu1 %v322_v6 }
   0xa   :  { %240 = vmatmul.mubr.msk.bf16.vlgmr.msra.gmra.mrb[0].mxu0 %vm60_vm0, %v23_v9 }
   0xb   :  { %10 = vsyncpa [#allocation3], 0  ;;  %v292_v11 = vld [vmem:[%s415_s3 + $0x18] sm:$0xff]   ;;  %v293_v12 = vld [vmem:[%s415_s3 + $0x20] sm:$0xff]   ;;  %vm323_vm1 = vmmov 0   ;;  %v30_v16 = vlaneseq  ;;  %vm220_vm2 = vcmask 392192  }
   0xc   :  { %264 = vmatpush3.bf16.msra.mxu1 %v291_v10  ;;  %v294_v13 = vld [vmem:[%s415_s3 + $0x28] sm:$0xff]   ;;  %v295_v14 = vld [vmem:[%s415_s3 + $0x30] sm:$0xff]   ;;  %v296_v15 = vld [vmem:[%s415_s3 + $0x38] sm:$0xff]   ;;  %275 = vmatprep.mubr.msk.bf16.mxu1 %vm323_vm1, %v322_v6 }
   0xd   :  { %265 = vmatprep.subr.bf16.mxu1 %v322_v6  ;;  %v31_v17 = vshrl.u32 %v30_v16, 7  ;;  %v28_v19 = vld [vmem:[%s414_s2] sm:$0x3]  ;;  %s324_s2 = smov [#allocation2]  }
   0xe   :  { %v241_v30 = vld [vmem:[%s416_s4] ss:$0 sm:$0xff]  ;;  %s228_s20 = sshll.u32 %s324_s2, 4  ;;  %s229_s20 = int_to_ptr.vmem [resolvable:$true] %s228_s20 }
   0xf   :  { %v32_v18 = vsub.s32 0, %v31_v17  ;;  %v36_v28 = vsub.s32 1, %v31_v17  ;;  %s297_s21 = scalar_lea.vmem %s229_s20, 128  ;;  %p302_p1 = scmp.lt.s32.totalorder %s229_s20, %s229_s20 }
  0x10   :  { %266 = vmatpush3.bf16.msra.mxu1 %v292_v11  ;;  %p298_p0 = scmp.ne.s32.totalorder %s229_s20, %s297_s21  ;;  %p303_p2 = scmp.lt.s32.totalorder %s297_s21, %s297_s21 }
  0x11   :  { %267 = vmatprep.subr.bf16.mxu1 %v322_v6  ;;  %v33_v20 = vrot.slane %v28_v19, %v32_v18  ;;  %v37_v29 = vrot.slane %v28_v19, %v36_v28 }
  0x12   :  { %p304_p3 = por %p303_p2, %p302_p1 }
  0x14   :  { %268 = vmatpush3.bf16.msra.mxu1 %v293_v12  ;;  %p305_p4 = pnand %p304_p3, %p298_p0 }
  0x15   :  { %269 = vmatprep.subr.bf16.mxu1 %v322_v6 }
  0x18   :  { %270 = vmatpush3.bf16.msra.mxu1 %v294_v13 }
  0x19   :  { %271 = vmatprep.subr.bf16.mxu1 %v322_v6 }
  0x1c   :  { %272 = vmatpush3.bf16.msra.mxu1 %v295_v14 }
  0x1d   :  { %273 = vmatprep.subr.bf16.mxu1 %v322_v6 }
  0x20   :  { %274 = vmatpush3.bf16.msra.mxu1 %v296_v15 }
  0xdd   :  { %v98_v21 = vpop.f32.mrb[0].mxu0 }
  0xde   :  { %v99_v22 = vadd.f32 %v98_v21, %v33_v20  ;;  %v100_v23 = vpop.f32.mrb[1].mxu0 }
  0xdf   :  { %v102_v24 = vpop.f32.mrb[2].mxu0  ;;  %v101_v32 = vadd.f32 %v100_v23, %v37_v29 }
  0xe0   :  { %v105_v25 = vmax.f32 %v99_v22, 0.0  ;;  %v103_v26 = vpop.f32.mrb[3].mxu0 }
  0xe2   :  { %v106_v27 = vpack.c.bf16 %v105_v25, %v105_v25 }
  0xe4   :  { %276 = vmatmul.mubr.bf16.vlgmr.msra.gmra.mrb[0].mxu1 %v106_v27 }
 0x1b7   :  { %v212_v31 = vpop.f32.mrb[0].mxu1 }
 0x1b8   :  { %v213_v33 = vadd.f32 %v241_v30, %v212_v31  ;;  %v277_v34 = vpop.f32.mrb[1].mxu1 }
 0x1b9   :  { %v215_v35 = vpop.f32.mrb[2].mxu1 }
 0x1ba   :  { %v218_v36 = vadd.f32 %v213_v33, %v101_v32  ;;  %v278_v37 = vpop.f32.mrb[3].mxu1 }
 0x1bc   :  { %v219_v38 = vmax.f32 %v218_v36, 0.0 }
 0x1be   :  { %221 = vst.msk [vmem:[#allocation2] sm:$0xff] %vm220_vm2, %v219_v38 }
 0x1bf   :  { %308 = shalt.err (!%p305_p4)
}
 0x1c0   :  { %s309_s23 = scalar_lea.hbm %s417_s5, 128 }
 0x1c1   :  { %p310_p5 = scmp.ne.s32.totalorder %s417_s5, %s309_s23  ;;  %p313_p6 = scmp.lt.u32.totalorder %s309_s23, %s417_s5 }
 0x1c3   :  { %p315_p7 = pnand %p313_p6, %p310_p5 }
 0x1c5   :  { %318 = shalt.err (!%p315_p7)
}
 0x1c6   :  { %231 = dma.vmem_to_hbm [thread:$0]  %s229_s20, 128, %s417_s5, [#allocation3]  }
 0x1c7   :  { %319 = dma.done.wait [#allocation3], 128  }
 0x1c8   :  { %320 = vsyncadd [#allocation3], 4294967168 }
 0x1c9   :  { %235 = vsyncpa [#allocation3], 1 }

</bundles_post_ra>
